<compile_context>
chip_gen: v7x
topology: tpu7x:2x2x1
jax: 0.10.0
libtpu: 0.0.40
codegen_flags: <defaults>
</compile_context>

<pallas_src>
import math

import jax
import jax.numpy as jnp
from jax import lax
from jax.experimental import pallas as pl
from jax.experimental.pallas import tpu as pltpu


def _round_up(n: int, m: int) -> int:
    return ((n + m - 1) // m) * m


def _final_layer_kernel(x_ref, w_ref, b_ref, o_ref):
    # x_ref: (TM, H)   w_ref: (C, H)   b_ref: (1, C)   o_ref: (TM, C)
    # x @ W^T on the MXU, contracting the hidden dim of both operands so no
    # transposed weight copy is ever materialized. Accumulation is f32.
    acc = lax.dot_general(
        x_ref[...],
        w_ref[...],
        dimension_numbers=(((1,), (1,)), ((), ())),
        preferred_element_type=jnp.float32,
    )
    o_ref[...] = (acc + b_ref[...]).astype(o_ref.dtype)


def final_layer_forward(x, weight, bias, *, return_features=False,
                        target_step_bytes=2 * 1024 * 1024,
                        vmem_budget_bytes=48 * 1024 * 1024):
    """Pallas implementation of _FinalLayer.forward.

    x      : (batch, hidden_channels), f32 or bf16 (kernel runs in x.dtype).
    weight : (n_classes, hidden_channels)  -- PyTorch nn.Linear layout.
    bias   : (n_classes,)
    Returns out (and x when return_features=True). out.dtype == x.dtype;
    MXU accumulation is always f32.
    """
    batch, hidden = x.shape
    n_classes = weight.shape[0]
    out_dtype = x.dtype
    x_itemsize = jnp.dtype(x.dtype).itemsize
    out_itemsize = jnp.dtype(out_dtype).itemsize

    # Tiny parameter-only casts (never an extra HBM pass over x).
    w = weight.astype(x.dtype)
    b = bias.reshape(1, n_classes).astype(jnp.float32)
    w_itemsize = jnp.dtype(w.dtype).itemsize

    # ---- adaptive batch tile ------------------------------------------------
    # (a) each grid step should move >= ~target_step_bytes of x so the
    #     ~0.35us/step overhead is amortized even at small hidden;
    tm_target = _round_up(
        max(1, -(-target_step_bytes // max(1, hidden * x_itemsize))), 8)
    # (b) VMEM budget: 2 x-buffers + params (worst-case double-buffered)
    #     + 2 out-buffers must fit with headroom (v7x has 64 MiB / TC);
    fixed_bytes = 2 * (n_classes * hidden * w_itemsize + n_classes * 4)
    per_row_bytes = 2 * hidden * x_itemsize + 2 * n_classes * out_itemsize
    tm_vmem = max(
        8,
        ((int(0.85 * vmem_budget_bytes) - fixed_bytes) // per_row_bytes) // 8 * 8)
    # (c) keep >= 2 grid steps when batch allows so v7x's two TensorCores both
    #     get work along the "parallel" batch axis (harmless on v5e/v6e).
    tm_2core = _round_up(pl.cdiv(batch, 2), 8)

    tm = min(tm_target, tm_vmem, tm_2core)
    if tm >= batch:
        tm = batch                     # single block == full array dim (legal)
    else:
        tm = max(8, (tm // 8) * 8)     # sublane-aligned; last block may be ragged
    grid_m = pl.cdiv(batch, tm)

    cost = pl.CostEstimate(
        flops=int(2 * batch * hidden * n_classes),
        transcendentals=0,
        bytes_accessed=int(batch * hidden * x_itemsize
                           + n_classes * hidden * w_itemsize
                           + n_classes * 4
                           + batch * n_classes * out_itemsize),
    )

    def _call(single_buffer_params):
        param_kwargs = (dict(pipeline_mode=pl.Buffered(1))
                        if single_buffer_params else {})
        return pl.pallas_call(
            _final_layer_kernel,
            out_shape=jax.ShapeDtypeStruct((batch, n_classes), out_dtype),
            grid=(grid_m,),
            in_specs=[
                pl.BlockSpec((tm, hidden), lambda i: (i, 0)),        # x tile
                pl.BlockSpec((n_classes, hidden), lambda i: (0, 0),  # whole W
                             **param_kwargs),
                pl.BlockSpec((1, n_classes), lambda i: (0, 0),       # whole b
                             **param_kwargs),
            ],
            out_specs=pl.BlockSpec((tm, n_classes), lambda i: (i, 0)),
            compiler_params=pltpu.CompilerParams(
                dimension_semantics=("parallel",),
                vmem_limit_bytes=vmem_budget_bytes,
            ),
            cost_estimate=cost,
        )(x, w, b)

    try:
        # Grid-invariant weight/bias: single VMEM buffer (frees one W copy).
        out = _call(True)
    except Exception:
        # Fallback if this JAX build rejects pipeline_mode / Buffered(1).
        out = _call(False)

    if return_features:
        return out, x
    return out


if __name__ == "__main__":
    # Shapes consistent with the module defaults: hidden_channels=32, small head.
    batch, hidden_channels, n_classes = 8, 32, 4

    key = jax.random.PRNGKey(0)
    kx, kw, kb = jax.random.split(key, 3)

    x = jax.random.normal(kx, (batch, hidden_channels), dtype=jnp.float32)
    # Deterministic init mimicking nn.Linear's uniform(-1/sqrt(H), 1/sqrt(H)).
    bound = 1.0 / math.sqrt(hidden_channels)
    weight = jax.random.uniform(kw, (n_classes, hidden_channels),
                                minval=-bound, maxval=bound, dtype=jnp.float32)
    bias = jax.random.uniform(kb, (n_classes,),
                              minval=-bound, maxval=bound, dtype=jnp.float32)

    ref = x @ weight.T + bias

    # f32 path (exact parity with nn.Linear).
    out = jax.block_until_ready(final_layer_forward(x, weight, bias))
    assert out.shape == (batch, n_classes) and out.dtype == x.dtype
    assert jnp.allclose(out, ref, atol=1e-5, rtol=1e-5), "f32 mismatch vs reference"

    # return_features=True path.
    out2, feats = final_layer_forward(x, weight, bias, return_features=True)
    jax.block_until_ready(out2)
    assert jnp.allclose(out2, ref, atol=1e-5, rtol=1e-5)
    assert jnp.array_equal(feats, x)

    # Ragged-batch path (batch % TM != 0): no wrapper padding, edge block masked.
    xr = jax.random.normal(kx, (67, hidden_channels), dtype=jnp.float32)
    outr = jax.block_until_ready(final_layer_forward(xr, weight, bias))
    refr = xr @ weight.T + bias
    assert outr.shape == (67, n_classes)
    assert jnp.allclose(outr, refr, atol=1e-5, rtol=1e-5), "ragged mismatch"

    # bf16-activation path: x arrives already bf16 from an upstream producer;
    # no wrapper cast, f32 accumulate, bf16 output writeback.
    xb = x.astype(jnp.bfloat16)
    outb = jax.block_until_ready(final_layer_forward(xb, weight, bias))
    assert outb.dtype == jnp.bfloat16
    assert jnp.allclose(outb.astype(jnp.float32), ref, atol=1e-1, rtol=5e-2), \
        "bf16 mismatch vs reference"

    print("KERNEL_OK")
</pallas_src>

<mosaic_0001>
module attributes {stable_mosaic.version = 11 : i64} {
  func.func @_final_layer_kernel(%arg0: i32, %arg1: memref<8x32xf32, #tpu.memory_space<vmem>>, %arg2: memref<4x32xf32, #tpu.memory_space<vmem>>, %arg3: memref<1x4xf32, #tpu.memory_space<vmem>>, %arg4: memref<8x4xf32, #tpu.memory_space<vmem>>) attributes {dimension_semantics = [#tpu.dimension_semantics<parallel>], iteration_bounds = array<i64: 1>, scalar_prefetch = 0 : i64, scratch_operands = 0 : i64, tpu.core_type = #tpu.core_type<tc>, window_params = [{transform_indices = @transform_0, window_bounds = array<i64: 8, 32>}, {pipeline_mode = #tpu.pipeline_mode<synchronous>, transform_indices = @transform_1, window_bounds = array<i64: 4, 32>}, {pipeline_mode = #tpu.pipeline_mode<synchronous>, transform_indices = @transform_2, window_bounds = array<i64: 1, 4>}, {transform_indices = @transform_3, window_bounds = array<i64: 8, 4>}]} {
    %c0 = arith.constant 0 : index
    %c0_0 = arith.constant 0 : index
    %0 = vector.load %arg1[%c0, %c0_0] : memref<8x32xf32, #tpu.memory_space<vmem>>, vector<8x32xf32>
    %c0_1 = arith.constant 0 : index
    %c0_2 = arith.constant 0 : index
    %1 = vector.load %arg2[%c0_1, %c0_2] : memref<4x32xf32, #tpu.memory_space<vmem>>, vector<4x32xf32>
    %cst = arith.constant dense<0.000000e+00> : vector<8x4xf32>
    %2 = tpu.matmul %0, %1, %cst {dimension_numbers = #tpu.dot_dimension_numbers<[1], [1], [0], [0], [0, 0, 1, 0], [], []>} : vector<8x32xf32>, vector<4x32xf32>, vector<8x4xf32> -> vector<8x4xf32>
    %c0_3 = arith.constant 0 : index
    %c0_4 = arith.constant 0 : index
    %3 = vector.load %arg3[%c0_3, %c0_4] : memref<1x4xf32, #tpu.memory_space<vmem>>, vector<1x4xf32>
    %4 = vector.broadcast %3 : vector<1x4xf32> to vector<8x4xf32>
    %5 = arith.addf %2, %4 : vector<8x4xf32>
    %c0_5 = arith.constant 0 : index
    %c0_6 = arith.constant 0 : index
    %6 = vector.load %arg4[%c0_5, %c0_6] : memref<8x4xf32, #tpu.memory_space<vmem>>, vector<8x4xf32>
    tpu.vector_store %arg4[%c0_5, %c0_6], %5 {strides = array<i32>} : memref<8x4xf32, #tpu.memory_space<vmem>>, vector<8x4xf32>,
    return
  }
  func.func @transform_0(%arg0: i32) -> (i32, i32) {
    %c0_i32 = arith.constant 0 : i32
    %c0_i32_0 = arith.constant 0 : i32
    return %arg0, %c0_i32 : i32, i32
  }
  func.func @transform_1(%arg0: i32) -> (i32, i32) {
    %c0_i32 = arith.constant 0 : i32
    %c0_i32_0 = arith.constant 0 : i32
    %c0_i32_1 = arith.constant 0 : i32
    return %c0_i32, %c0_i32_0 : i32, i32
  }
  func.func @transform_2(%arg0: i32) -> (i32, i32) {
    %c0_i32 = arith.constant 0 : i32
    %c0_i32_0 = arith.constant 0 : i32
    %c0_i32_1 = arith.constant 0 : i32
    return %c0_i32, %c0_i32_0 : i32, i32
  }
  func.func @transform_3(%arg0: i32) -> (i32, i32) {
    %c0_i32 = arith.constant 0 : i32
    %c0_i32_0 = arith.constant 0 : i32
    return %arg0, %c0_i32 : i32, i32
  }
}

module attributes {stable_mosaic.version = 11 : i64} {
  func.func @_final_layer_kernel(%arg0: i32, %arg1: memref<8x32xf32, #tpu.memory_space<vmem>>, %arg2: memref<4x32xf32, #tpu.memory_space<vmem>>, %arg3: memref<1x4xf32, #tpu.memory_space<vmem>>, %arg4: memref<8x4xf32, #tpu.memory_space<vmem>>) attributes {dimension_semantics = [#tpu.dimension_semantics<parallel>], iteration_bounds = array<i64: 1>, scalar_prefetch = 0 : i64, scratch_operands = 0 : i64, tpu.core_type = #tpu.core_type<tc>, window_params = [{transform_indices = @transform_0, window_bounds = array<i64: 8, 32>}, {pipeline_mode = #tpu.pipeline_mode<synchronous>, transform_indices = @transform_1, window_bounds = array<i64: 4, 32>}, {pipeline_mode = #tpu.pipeline_mode<synchronous>, transform_indices = @transform_2, window_bounds = array<i64: 1, 4>}, {transform_indices = @transform_3, window_bounds = array<i64: 8, 4>}]} {
    %c0 = arith.constant 0 : index
    %c0_0 = arith.constant 0 : index
    %0 = vector.load %arg1[%c0, %c0_0] : memref<8x32xf32, #tpu.memory_space<vmem>>, vector<8x32xf32>
    %c0_1 = arith.constant 0 : index
    %c0_2 = arith.constant 0 : index
    %1 = vector.load %arg2[%c0_1, %c0_2] : memref<4x32xf32, #tpu.memory_space<vmem>>, vector<4x32xf32>
    %cst = arith.constant dense<0.000000e+00> : vector<8x4xf32>
    %2 = tpu.matmul %0, %1, %cst {dimension_numbers = #tpu.dot_dimension_numbers<[1], [1], [0], [0], [0, 0, 1, 0], [], []>} : vector<8x32xf32>, vector<4x32xf32>, vector<8x4xf32> -> vector<8x4xf32>
    %c0_3 = arith.constant 0 : index
    %c0_4 = arith.constant 0 : index
    %3 = vector.load %arg3[%c0_3, %c0_4] : memref<1x4xf32, #tpu.memory_space<vmem>>, vector<1x4xf32>
    %4 = vector.broadcast %3 : vector<1x4xf32> to vector<8x4xf32>
    %5 = arith.addf %2, %4 : vector<8x4xf32>
    %c0_5 = arith.constant 0 : index
    %c0_6 = arith.constant 0 : index
    %6 = vector.load %arg4[%c0_5, %c0_6] : memref<8x4xf32, #tpu.memory_space<vmem>>, vector<8x4xf32>
    tpu.vector_store %arg4[%c0_5, %c0_6], %5 {strides = array<i32>} : memref<8x4xf32, #tpu.memory_space<vmem>>, vector<8x4xf32>,
    return
  }
  func.func @transform_0(%arg0: i32) -> (i32, i32) {
    %c0_i32 = arith.constant 0 : i32
    %c0_i32_0 = arith.constant 0 : i32
    return %arg0, %c0_i32 : i32, i32
  }
  func.func @transform_1(%arg0: i32) -> (i32, i32) {
    %c0_i32 = arith.constant 0 : i32
    %c0_i32_0 = arith.constant 0 : i32
    %c0_i32_1 = arith.constant 0 : i32
    return %c0_i32, %c0_i32_0 : i32, i32
  }
  func.func @transform_2(%arg0: i32) -> (i32, i32) {
    %c0_i32 = arith.constant 0 : i32
    %c0_i32_0 = arith.constant 0 : i32
    %c0_i32_1 = arith.constant 0 : i32
    return %c0_i32, %c0_i32_0 : i32, i32
  }
  func.func @transform_3(%arg0: i32) -> (i32, i32) {
    %c0_i32 = arith.constant 0 : i32
    %c0_i32_0 = arith.constant 0 : i32
    return %arg0, %c0_i32 : i32, i32
  }
}

</mosaic_0001>

<bundles_post_ra>
// kernel: tpu_custom_call.1
= control target key start
LH: loop header
LB: loop body
LE: loop exit
PB: predicated region body
PF: predicated region fallthrough
CT: control target
= control target key end

     0   :  { %8 = vsyncpa [#allocation3], 0  ;;  %s248_s0 = inlined_call_operand.hbm [shape: f32[8,32], index: 0, kind: input, shape index: {}]   ;;  %s249_s1 = inlined_call_operand.hbm [shape: f32[4,32], index: 1, kind: input, shape index: {}]   ;;  %s250_s2 = inlined_call_operand.vmem [shape: f32[1,4], index: 2, kind: input, shape index: {}]   ;;  %s251_s3 = inlined_call_operand.vmem [shape: f32[8,4], index: 3, kind: output, shape index: {}]  }
   0x1   :  { %9 = vsyncpa [#allocation5], 0  ;;  %s194_s12 = smov [#allocation2]   ;;  %s195_s14 = smov [#allocation4]  }
   0x2   :  { %s16_s13 = sshll.u32 %s194_s12, 4  ;;  %s26_s15 = sshll.u32 %s195_s14, 4  ;;  %s17_s13 = int_to_ptr.vmem [resolvable:$true] %s16_s13  ;;  %s27_s15 = int_to_ptr.vmem [resolvable:$true] %s26_s15 }
   0x3   :  { %s146_s18 = scalar_lea.hbm %s248_s0, 128 }
   0x4   :  { %p147_p0 = scmp.ne.s32.totalorder %s248_s0, %s146_s18  ;;  %p150_p1 = scmp.lt.u32.totalorder %s146_s18, %s248_s0 }
   0x6   :  { %p152_p2 = pnand %p150_p1, %p147_p0 }
   0x8   :  { %155 = shalt.err (!%p152_p2)
}
   0x9   :  { %s156_s23 = scalar_lea.vmem %s17_s13, 128  ;;  %p161_p4 = scmp.lt.s32.totalorder %s17_s13, %s17_s13 }
   0xa   :  { %p157_p3 = scmp.ne.s32.totalorder %s17_s13, %s156_s23  ;;  %p162_p5 = scmp.lt.s32.totalorder %s156_s23, %s156_s23 }
   0xc   :  { %p163_p6 = por %p162_p5, %p161_p4 }
   0xe   :  { %p164_p7 = pnand %p163_p6, %p157_p3 }
  0x10   :  { %167 = shalt.err (!%p164_p7)
}
  0x11   :  { %19 = dma.hbm_to_vmem [thread:$0]  %s248_s0, 128, %s17_s13, [#allocation3]  }
  0x12   :  { %s168_s28 = scalar_lea.hbm %s249_s1, 64 }
  0x13   :  { %p169_p8 = scmp.ne.s32.totalorder %s249_s1, %s168_s28  ;;  %p172_p9 = scmp.lt.u32.totalorder %s168_s28, %s249_s1 }
  0x15   :  { %p174_p10 = pnand %p172_p9, %p169_p8 }
  0x17   :  { %177 = shalt.err (!%p174_p10)
}
  0x18   :  { %s178_s6 = scalar_lea.vmem %s27_s15, 64  ;;  %p183_p12 = scmp.lt.s32.totalorder %s27_s15, %s27_s15 }
  0x19   :  { %p179_p11 = scmp.ne.s32.totalorder %s27_s15, %s178_s6  ;;  %p184_p13 = scmp.lt.s32.totalorder %s178_s6, %s178_s6 }
  0x1b   :  { %p185_p0 = por %p184_p13, %p183_p12 }
  0x1d   :  { %p186_p1 = pnand %p185_p0, %p179_p11 }
  0x1f   :  { %189 = shalt.err (!%p186_p1)
}
  0x20   :  { %29 = dma.hbm_to_vmem [thread:$0]  %s249_s1, 64, %s27_s15, [#allocation5]  }
  0x21   :  { %190 = dma.done.wait [#allocation3], 128  }
  0x22   :  { %191 = vsyncadd [#allocation3], 4294967168 }
  0x23   :  { %192 = dma.done.wait [#allocation5], 64  }
  0x24   :  { %193 = vsyncadd [#allocation5], 4294967232  ;;  %v196_v0 = vmov 0.0   ;;  %vm197_vm0 = vmmov 0   ;;  %vm47_vm1 = vcmask 261120   ;;  %v38_v2 = vld [vmem:[#allocation2] sm:$0xff] }
  0x25   :  { %137 = vmatprep.subr.mxu0 %v196_v0  ;;  %139 = vmatprep.mubr.msk.f32.mxu0 %vm197_vm0, %v196_v0  ;;  %v39_v1 = vld [vmem:[#allocation4] sm:$0xf]  ;;  %v132_v3 = vld [vmem:[%s250_s2] ss:$0 sm:$0xff]  ;;  %vm124_vm2 = vcmask 31744  }
  0x26   :  { %138 = vmatpush3.xpose.msk.msra.mxu0 %vm47_vm1, %v39_v1 }
  0x29   :  { %140 = vmatmul.mubr.msk.f32.vlgmr.msra.gmra.mrb[0].mxu0 %vm47_vm1, %v38_v2 }
  0xfc   :  { %v120_v4 = vpop.f32.mrb[0].mxu0 }
  0xfd   :  { %v121_v5 = vadd.f32 %v132_v3, %v120_v4  ;;  %v141_v6 = vpop.f32.mrb[1].mxu0 }
  0xff   :  { %125 = vst.msk [vmem:[%s251_s3] sm:$0xff] %vm124_vm2, %v121_v5 }
 0x100   :  { %130 = vsyncpa [#allocation3], 1 }
 0x101   :  { %131 = vsyncpa [#allocation5], 1 }

// kernel: tpu_custom_call.1
= control target key start
LH: loop header
LB: loop body
LE: loop exit
PB: predicated region body
PF: predicated region fallthrough
CT: control target
= control target key end

     0   :  { %8 = vsyncpa [#allocation3], 0  ;;  %s248_s0 = inlined_call_operand.hbm [shape: f32[8,32], index: 0, kind: input, shape index: {}]   ;;  %s249_s1 = inlined_call_operand.hbm [shape: f32[4,32], index: 1, kind: input, shape index: {}]   ;;  %s250_s2 = inlined_call_operand.vmem [shape: f32[1,4], index: 2, kind: input, shape index: {}]   ;;  %s251_s3 = inlined_call_operand.vmem [shape: f32[8,4], index: 3, kind: output, shape index: {}]  }
   0x1   :  { %9 = vsyncpa [#allocation5], 0  ;;  %s194_s12 = smov [#allocation2]   ;;  %s195_s14 = smov [#allocation4]  }
   0x2   :  { %s16_s13 = sshll.u32 %s194_s12, 4  ;;  %s26_s15 = sshll.u32 %s195_s14, 4  ;;  %s17_s13 = int_to_ptr.vmem [resolvable:$true] %s16_s13  ;;  %s27_s15 = int_to_ptr.vmem [resolvable:$true] %s26_s15 }
   0x3   :  { %s146_s18 = scalar_lea.hbm %s248_s0, 128 }
   0x4   :  { %p147_p0 = scmp.ne.s32.totalorder %s248_s0, %s146_s18  ;;  %p150_p1 = scmp.lt.u32.totalorder %s146_s18, %s248_s0 }
   0x6   :  { %p152_p2 = pnand %p150_p1, %p147_p0 }
   0x8   :  { %155 = shalt.err (!%p152_p2)
}
   0x9   :  { %s156_s23 = scalar_lea.vmem %s17_s13, 128  ;;  %p161_p4 = scmp.lt.s32.totalorder %s17_s13, %s17_s13 }
   0xa   :  { %p157_p3 = scmp.ne.s32.totalorder %s17_s13, %s156_s23  ;;  %p162_p5 = scmp.lt.s32.totalorder %s156_s23, %s156_s23 }
   0xc   :  { %p163_p6 = por %p162_p5, %p161_p4 }
   0xe   :  { %p164_p7 = pnand %p163_p6, %p157_p3 }
  0x10   :  { %167 = shalt.err (!%p164_p7)
}
  0x11   :  { %19 = dma.hbm_to_vmem [thread:$0]  %s248_s0, 128, %s17_s13, [#allocation3]  }
  0x12   :  { %s168_s28 = scalar_lea.hbm %s249_s1, 64 }
  0x13   :  { %p169_p8 = scmp.ne.s32.totalorder %s249_s1, %s168_s28  ;;  %p172_p9 = scmp.lt.u32.totalorder %s168_s28, %s249_s1 }
  0x15   :  { %p174_p10 = pnand %p172_p9, %p169_p8 }
  0x17   :  { %177 = shalt.err (!%p174_p10)
}
  0x18   :  { %s178_s6 = scalar_lea.vmem %s27_s15, 64  ;;  %p183_p12 = scmp.lt.s32.totalorder %s27_s15, %s27_s15 }
  0x19   :  { %p179_p11 = scmp.ne.s32.totalorder %s27_s15, %s178_s6  ;;  %p184_p13 = scmp.lt.s32.totalorder %s178_s6, %s178_s6 }
  0x1b   :  { %p185_p0 = por %p184_p13, %p183_p12 }
  0x1d   :  { %p186_p1 = pnand %p185_p0, %p179_p11 }
  0x1f   :  { %189 = shalt.err (!%p186_p1)
}
  0x20   :  { %29 = dma.hbm_to_vmem [thread:$0]  %s249_s1, 64, %s27_s15, [#allocation5]  }
  0x21   :  { %190 = dma.done.wait [#allocation3], 128  }
  0x22   :  { %191 = vsyncadd [#allocation3], 4294967168 }
  0x23   :  { %192 = dma.done.wait [#allocation5], 64  }
  0x24   :  { %193 = vsyncadd [#allocation5], 4294967232  ;;  %v196_v0 = vmov 0.0   ;;  %vm197_vm0 = vmmov 0   ;;  %vm47_vm1 = vcmask 261120   ;;  %v38_v2 = vld [vmem:[#allocation2] sm:$0xff] }
  0x25   :  { %137 = vmatprep.subr.mxu0 %v196_v0  ;;  %139 = vmatprep.mubr.msk.f32.mxu0 %vm197_vm0, %v196_v0  ;;  %v39_v1 = vld [vmem:[#allocation4] sm:$0xf]  ;;  %v132_v3 = vld [vmem:[%s250_s2] ss:$0 sm:$0xff]  ;;  %vm124_vm2 = vcmask 31744  }
  0x26   :  { %138 = vmatpush3.xpose.msk.msra.mxu0 %vm47_vm1, %v39_v1 }
  0x29   :  { %140 = vmatmul.mubr.msk.f32.vlgmr.msra.gmra.mrb[0].mxu0 %vm47_vm1, %v38_v2 }
  0xfc   :  { %v120_v4 = vpop.f32.mrb[0].mxu0 }
  0xfd   :  { %v121_v5 = vadd.f32 %v132_v3, %v120_v4  ;;  %v141_v6 = vpop.f32.mrb[1].mxu0 }
  0xff   :  { %125 = vst.msk [vmem:[%s251_s3] sm:$0xff] %vm124_vm2, %v121_v5 }
 0x100   :  { %130 = vsyncpa [#allocation3], 1 }
 0x101   :  { %131 = vsyncpa [#allocation5], 1 }

</bundles_post_ra>
